<compile_context>
chip_gen: v7x
topology: tpu7x:2x2x1
jax: 0.10.0
libtpu: 0.0.40
codegen_flags: <defaults>
</compile_context>

<pallas_src>
import jax
import jax.numpy as jnp
from jax import lax
from jax.experimental import pallas as pl
from jax.experimental.pallas import tpu as pltpu
import numpy as np

# ---------------- model config (small, consistent with the module) -----------
S = 8          # sequence length
B = 2          # batch (power of two -> batch id via bitwise AND)
D = 32         # d_model
H = 4          # n_head
DH = D // H    # head dim
N = S * B      # tokens processed in the single fused step
EPS = 1e-12    # the module's own LayerNorm default (TF style, inside the sqrt)
NEG_INF = -1e30


def _layernorm(x, w, b):
    # x: (N, D), w/b: (1, D)
    u = jnp.mean(x, axis=-1, keepdims=True)
    s = jnp.mean(jnp.square(x - u), axis=-1, keepdims=True)
    return w * ((x - u) * lax.rsqrt(s + EPS)) + b


def _quick_gelu(x):
    return x * jax.nn.sigmoid(1.702 * x)


def residual_attention_block_kernel(
    x_ref,                    # (N, D)   token r == (seq r // B, batch r % B)
    ln1_w_ref, ln1_b_ref,     # (1, D)
    ln2_w_ref, ln2_b_ref,     # (1, D)
    wqkv_ref, bqkv_ref,       # (D, 3D), (1, 3D)   -- in_proj_weight.T / bias
    wo_ref, bo_ref,           # (D, D),  (1, D)    -- out_proj.weight.T / bias
    wfc_ref, bfc_ref,         # (D, 4D), (1, 4D)   -- c_fc.weight.T / bias
    wpr_ref, bpr_ref,         # (4D, D), (1, D)    -- c_proj.weight.T / bias
    o_ref,                    # (N, D)
):
    x = x_ref[...]                                               # (N, D)

    # ---- LN1 + multi-head self attention ------------------------------------
    h = _layernorm(x, ln1_w_ref[...], ln1_b_ref[...])            # (N, D)

    qkv = jnp.dot(h, wqkv_ref[...],
                  preferred_element_type=jnp.float32) + bqkv_ref[...]  # (N, 3D)

    # Block-diagonal batch mask: token r belongs to batch (r % B) == (r & (B-1)).
    rows = lax.broadcasted_iota(jnp.int32, (N, N), 0)
    cols = lax.broadcasted_iota(jnp.int32, (N, N), 1)
    same_batch = jnp.bitwise_and(rows, B - 1) == jnp.bitwise_and(cols, B - 1)
    bias = jnp.where(same_batch, 0.0, NEG_INF).astype(jnp.float32)     # (N, N)

    scale = 1.0 / (DH ** 0.5)
    ctx_acc = jnp.zeros((N, D), jnp.float32)
    for hd in range(H):                                  # static loop over heads
        lo = hd * DH
        q_h = qkv[:, lo:lo + DH] * scale                 # (N, DH)
        k_h = qkv[:, D + lo:D + lo + DH]                 # (N, DH)
        v_h = qkv[:, 2 * D + lo:2 * D + lo + DH]         # (N, DH)

        # scores = q_h @ k_h.T without materializing a transpose
        s = lax.dot_general(q_h, k_h, (((1,), (1,)), ((), ())),
                            preferred_element_type=jnp.float32)        # (N, N)
        s = s + bias
        m = jnp.max(s, axis=-1, keepdims=True)
        e = jnp.exp(s - m)
        denom = jnp.sum(e, axis=-1, keepdims=True)
        p = e * pl.reciprocal(denom, approx=True)        # EUP reciprocal

        ctx_h = jnp.dot(p, v_h, preferred_element_type=jnp.float32)    # (N, DH)
        # Accumulate the out-projection head-by-head: avoids any lane concat.
        ctx_acc = ctx_acc + jnp.dot(ctx_h, wo_ref[lo:lo + DH, :],
                                    preferred_element_type=jnp.float32)

    attn_out = ctx_acc + bo_ref[...]
    x1 = x + attn_out                                    # residual 1

    # ---- LN2 + MLP (c_fc -> QuickGELU -> c_proj) -----------------------------
    h2 = _layernorm(x1, ln2_w_ref[...], ln2_b_ref[...])
    fc = jnp.dot(h2, wfc_ref[...],
                 preferred_element_type=jnp.float32) + bfc_ref[...]    # (N, 4D)
    fc = _quick_gelu(fc)
    mlp_out = jnp.dot(fc, wpr_ref[...],
                      preferred_element_type=jnp.float32) + bpr_ref[...]

    o_ref[...] = x1 + mlp_out                            # residual 2


def residual_attention_block(x_sbd, params):
    """x_sbd: (S, B, D) float32 (seq-first, like torch MHA). Returns (S, B, D)."""
    # Free row-major reshape: token r = (seq r // B, batch r % B). No transposes.
    x_tok = x_sbd.reshape(N, D)

    # Pre-transpose all weights once, outside the kernel.
    wqkv_t = params["wqkv"].T          # (D, 3D)
    wo_t = params["wo"].T              # (D, D)
    wfc_t = params["wfc"].T            # (D, 4D)
    wpr_t = params["wpr"].T            # (4D, D)

    operands = (
        x_tok,
        params["ln1_w"], params["ln1_b"],
        params["ln2_w"], params["ln2_b"],
        wqkv_t, params["bqkv"],
        wo_t, params["bo"],
        wfc_t, params["bfc"],
        wpr_t, params["bpr"],
    )
    in_specs = [pl.BlockSpec(op.shape, lambda i: (0, 0)) for op in operands]

    out = pl.pallas_call(
        residual_attention_block_kernel,
        out_shape=jax.ShapeDtypeStruct((N, D), jnp.float32),
        grid=(1,),
        in_specs=in_specs,
        out_specs=pl.BlockSpec((N, D), lambda i: (0, 0)),
        compiler_params=pltpu.CompilerParams(
            dimension_semantics=("arbitrary",)),
    )(*operands)

    return out.reshape(S, B, D)


def _reference(x_sbd, p):
    """Pure-JAX reference mirroring the PyTorch forward (for sanity checking)."""
    def ln(x, w, b):
        u = x.mean(-1, keepdims=True)
        s = ((x - u) ** 2).mean(-1, keepdims=True)
        return w[0] * ((x - u) / jnp.sqrt(s + EPS)) + b[0]

    x = x_sbd  # (S, B, D)
    h = ln(x, p["ln1_w"], p["ln1_b"])
    qkv = jnp.einsum('sbd,ed->sbe', h, p["wqkv"]) + p["bqkv"][0]
    q, k, v = qkv[..., :D], qkv[..., D:2 * D], qkv[..., 2 * D:]
    qh = (q / jnp.sqrt(DH)).reshape(S, B, H, DH)
    kh = k.reshape(S, B, H, DH)
    vh = v.reshape(S, B, H, DH)
    sc = jnp.einsum('qbhd,kbhd->bhqk', qh, kh)
    pr = jax.nn.softmax(sc, axis=-1)
    ctx = jnp.einsum('bhqk,kbhd->qbhd', pr, vh).reshape(S, B, D)
    attn = jnp.einsum('sbd,ed->sbe', ctx, p["wo"]) + p["bo"][0]
    x1 = x + attn
    h2 = ln(x1, p["ln2_w"], p["ln2_b"])
    fc = jnp.einsum('sbd,ed->sbe', h2, p["wfc"]) + p["bfc"][0]
    fc = fc * jax.nn.sigmoid(1.702 * fc)
    mlp = jnp.einsum('sbe,de->sbd', fc, p["wpr"]) + p["bpr"][0]
    return x1 + mlp


if __name__ == "__main__":
    key = jax.random.PRNGKey(0)
    keys = jax.random.split(key, 8)

    x = jax.random.normal(keys[0], (S, B, D), dtype=jnp.float32)

    def w(k, shape, scale=0.02):
        return (scale * jax.random.normal(k, shape)).astype(jnp.float32)

    params = {
        "ln1_w": jnp.ones((1, D), jnp.float32),
        "ln1_b": jnp.zeros((1, D), jnp.float32),
        "ln2_w": jnp.ones((1, D), jnp.float32),
        "ln2_b": jnp.zeros((1, D), jnp.float32),
        "wqkv": w(keys[1], (3 * D, D)),       # torch in_proj_weight layout
        "bqkv": w(keys[2], (1, 3 * D)),
        "wo":   w(keys[3], (D, D)),           # torch out_proj.weight layout
        "bo":   jnp.zeros((1, D), jnp.float32),
        "wfc":  w(keys[4], (4 * D, D)),       # torch mlp.c_fc.weight layout
        "bfc":  w(keys[5], (1, 4 * D)),
        "wpr":  w(keys[6], (D, 4 * D)),       # torch mlp.c_proj.weight layout
        "bpr":  jnp.zeros((1, D), jnp.float32),
    }

    out = jax.block_until_ready(residual_attention_block(x, params))

    ref = _reference(x, params)
    np.testing.assert_allclose(np.asarray(out), np.asarray(ref),
                               rtol=1e-3, atol=1e-3)
    print("KERNEL_OK")
</pallas_src>

<mosaic_0001>
module attributes {stable_mosaic.version = 11 : i64} {
  func.func @residual_attention_block_kernel(%arg0: i32, %arg1: memref<16x32xf32, #tpu.memory_space<vmem>>, %arg2: memref<1x32xf32, #tpu.memory_space<vmem>>, %arg3: memref<1x32xf32, #tpu.memory_space<vmem>>, %arg4: memref<1x32xf32, #tpu.memory_space<vmem>>, %arg5: memref<1x32xf32, #tpu.memory_space<vmem>>, %arg6: memref<32x96xf32, #tpu.memory_space<vmem>>, %arg7: memref<1x96xf32, #tpu.memory_space<vmem>>, %arg8: memref<32x32xf32, #tpu.memory_space<vmem>>, %arg9: memref<1x32xf32, #tpu.memory_space<vmem>>, %arg10: memref<32x128xf32, #tpu.memory_space<vmem>>, %arg11: memref<1x128xf32, #tpu.memory_space<vmem>>, %arg12: memref<128x32xf32, #tpu.memory_space<vmem>>, %arg13: memref<1x32xf32, #tpu.memory_space<vmem>>, %arg14: memref<16x32xf32, #tpu.memory_space<vmem>>) attributes {dimension_semantics = [#tpu.dimension_semantics<arbitrary>], iteration_bounds = array<i64: 1>, scalar_prefetch = 0 : i64, scratch_operands = 0 : i64, tpu.core_type = #tpu.core_type<tc>, window_params = [{pipeline_mode = #tpu.pipeline_mode<synchronous>, transform_indices = @transform_0, window_bounds = array<i64: 16, 32>}, {pipeline_mode = #tpu.pipeline_mode<synchronous>, transform_indices = @transform_1, window_bounds = array<i64: 1, 32>}, {pipeline_mode = #tpu.pipeline_mode<synchronous>, transform_indices = @transform_2, window_bounds = array<i64: 1, 32>}, {pipeline_mode = #tpu.pipeline_mode<synchronous>, transform_indices = @transform_3, window_bounds = array<i64: 1, 32>}, {pipeline_mode = #tpu.pipeline_mode<synchronous>, transform_indices = @transform_4, window_bounds = array<i64: 1, 32>}, {pipeline_mode = #tpu.pipeline_mode<synchronous>, transform_indices = @transform_5, window_bounds = array<i64: 32, 96>}, {pipeline_mode = #tpu.pipeline_mode<synchronous>, transform_indices = @transform_6, window_bounds = array<i64: 1, 96>}, {pipeline_mode = #tpu.pipeline_mode<synchronous>, transform_indices = @transform_7, window_bounds = array<i64: 32, 32>}, {pipeline_mode = #tpu.pipeline_mode<synchronous>, transform_indices = @transform_8, window_bounds = array<i64: 1, 32>}, {pipeline_mode = #tpu.pipeline_mode<synchronous>, transform_indices = @transform_9, window_bounds = array<i64: 32, 128>}, {pipeline_mode = #tpu.pipeline_mode<synchronous>, transform_indices = @transform_10, window_bounds = array<i64: 1, 128>}, {pipeline_mode = #tpu.pipeline_mode<synchronous>, transform_indices = @transform_11, window_bounds = array<i64: 128, 32>}, {pipeline_mode = #tpu.pipeline_mode<synchronous>, transform_indices = @transform_12, window_bounds = array<i64: 1, 32>}, {pipeline_mode = #tpu.pipeline_mode<synchronous>, transform_indices = @transform_13, window_bounds = array<i64: 16, 32>}]} {
    %c0 = arith.constant 0 : index
    %c0_0 = arith.constant 0 : index
    %0 = vector.load %arg1[%c0, %c0_0] : memref<16x32xf32, #tpu.memory_space<vmem>>, vector<16x32xf32>
    %c0_1 = arith.constant 0 : index
    %c0_2 = arith.constant 0 : index
    %1 = vector.load %arg2[%c0_1, %c0_2] : memref<1x32xf32, #tpu.memory_space<vmem>>, vector<1x32xf32>
    %c0_3 = arith.constant 0 : index
    %c0_4 = arith.constant 0 : index
    %2 = vector.load %arg3[%c0_3, %c0_4] : memref<1x32xf32, #tpu.memory_space<vmem>>, vector<1x32xf32>
    %cst = arith.constant dense<0.000000e+00> : vector<16xf32>
    %3 = vector.multi_reduction <add>, %0, %cst [1] : vector<16x32xf32> to vector<16xf32>
    %4 = vector.shape_cast %3 : vector<16xf32> to vector<16x1xf32>
    %cst_5 = arith.constant 3.200000e+01 : f32
    %5 = vector.broadcast %cst_5 : f32 to vector<16x1xf32>
    %6 = arith.divf %4, %5 : vector<16x1xf32>
    %7 = vector.broadcast %6 : vector<16x1xf32> to vector<16x32xf32>
    %8 = arith.subf %0, %7 : vector<16x32xf32>
    %9 = arith.mulf %8, %8 : vector<16x32xf32>
    %cst_6 = arith.constant dense<0.000000e+00> : vector<16xf32>
    %10 = vector.multi_reduction <add>, %9, %cst_6 [1] : vector<16x32xf32> to vector<16xf32>
    %11 = vector.shape_cast %10 : vector<16xf32> to vector<16x1xf32>
    %cst_7 = arith.constant 3.200000e+01 : f32
    %12 = vector.broadcast %cst_7 : f32 to vector<16x1xf32>
    %13 = arith.divf %11, %12 : vector<16x1xf32>
    %14 = vector.broadcast %6 : vector<16x1xf32> to vector<16x32xf32>
    %15 = arith.subf %0, %14 : vector<16x32xf32>
    %cst_8 = arith.constant 9.99999996E-13 : f32
    %16 = vector.broadcast %cst_8 : f32 to vector<16x1xf32>
    %17 = arith.addf %13, %16 : vector<16x1xf32>
    %18 = math.rsqrt %17 : vector<16x1xf32>
    %19 = vector.broadcast %18 : vector<16x1xf32> to vector<16x32xf32>
    %20 = arith.mulf %15, %19 : vector<16x32xf32>
    %21 = vector.broadcast %1 : vector<1x32xf32> to vector<16x32xf32>
    %22 = arith.mulf %21, %20 : vector<16x32xf32>
    %23 = vector.broadcast %2 : vector<1x32xf32> to vector<16x32xf32>
    %24 = arith.addf %22, %23 : vector<16x32xf32>
    %c0_9 = arith.constant 0 : index
    %c0_10 = arith.constant 0 : index
    %25 = vector.load %arg6[%c0_9, %c0_10] : memref<32x96xf32, #tpu.memory_space<vmem>>, vector<32x96xf32>
    %cst_11 = arith.constant dense<0.000000e+00> : vector<16x96xf32>
    %26 = tpu.matmul %24, %25, %cst_11 {dimension_numbers = #tpu.dot_dimension_numbers<[1], [0], [0], [1], [0, 0, 1, 1], [], []>} : vector<16x32xf32>, vector<32x96xf32>, vector<16x96xf32> -> vector<16x96xf32>
    %c0_12 = arith.constant 0 : index
    %c0_13 = arith.constant 0 : index
    %27 = vector.load %arg7[%c0_12, %c0_13] : memref<1x96xf32, #tpu.memory_space<vmem>>, vector<1x96xf32>
    %28 = vector.broadcast %27 : vector<1x96xf32> to vector<16x96xf32>
    %29 = arith.addf %26, %28 : vector<16x96xf32>
    %30 = tpu.iota {dimensions = array<i32: 0>} : vector<16x16xi32>
    %31 = tpu.iota {dimensions = array<i32: 1>} : vector<16x16xi32>
    %c1_i32 = arith.constant 1 : i32
    %32 = vector.broadcast %c1_i32 : i32 to vector<16x16xi32>
    %33 = arith.andi %30, %32 : vector<16x16xi32>
    %c1_i32_14 = arith.constant 1 : i32
    %34 = vector.broadcast %c1_i32_14 : i32 to vector<16x16xi32>
    %35 = arith.andi %31, %34 : vector<16x16xi32>
    %36 = arith.cmpi eq, %33, %35 : vector<16x16xi32>
    %cst_15 = arith.constant 0.000000e+00 : f32
    %cst_16 = arith.constant -1.000000e+30 : f32
    %37 = vector.broadcast %cst_15 : f32 to vector<16x16xf32>
    %38 = vector.broadcast %cst_16 : f32 to vector<16x16xf32>
    %39 = arith.select %36, %37, %38 : vector<16x16xi1>, vector<16x16xf32>
    %cst_17 = arith.constant 0.000000e+00 : f32
    %40 = vector.broadcast %cst_17 : f32 to vector<16x32xf32>
    %41 = vector.extract_strided_slice %29 {offsets = [0, 0], sizes = [16, 8], strides = [1, 1]} : vector<16x96xf32> to vector<16x8xf32>
    %cst_18 = arith.constant 0.353553385 : f32
    %42 = vector.broadcast %cst_18 : f32 to vector<16x8xf32>
    %43 = arith.mulf %41, %42 : vector<16x8xf32>
    %44 = vector.extract_strided_slice %29 {offsets = [0, 32], sizes = [16, 8], strides = [1, 1]} : vector<16x96xf32> to vector<16x8xf32>
    %45 = vector.extract_strided_slice %29 {offsets = [0, 64], sizes = [16, 8], strides = [1, 1]} : vector<16x96xf32> to vector<16x8xf32>
    %cst_19 = arith.constant dense<0.000000e+00> : vector<16x16xf32>
    %46 = tpu.matmul %43, %44, %cst_19 {dimension_numbers = #tpu.dot_dimension_numbers<[1], [1], [0], [0], [0, 0, 1, 0], [], []>} : vector<16x8xf32>, vector<16x8xf32>, vector<16x16xf32> -> vector<16x16xf32>
    %47 = arith.addf %46, %39 : vector<16x16xf32>
    %cst_20 = arith.constant dense<0xFF800000> : vector<16xf32>
    %48 = vector.multi_reduction <maximumf>, %47, %cst_20 [1] : vector<16x16xf32> to vector<16xf32>
    %49 = vector.shape_cast %48 : vector<16xf32> to vector<16x1xf32>
    %50 = vector.broadcast %49 : vector<16x1xf32> to vector<16x16xf32>
    %51 = arith.subf %47, %50 : vector<16x16xf32>
    %52 = math.exp %51 : vector<16x16xf32>
    %cst_21 = arith.constant dense<0.000000e+00> : vector<16xf32>
    %53 = vector.multi_reduction <add>, %52, %cst_21 [1] : vector<16x16xf32> to vector<16xf32>
    %54 = vector.shape_cast %53 : vector<16xf32> to vector<16x1xf32>
    %55 = tpu.reciprocal %54 {approx = true} : vector<16x1xf32> -> vector<16x1xf32>
    %56 = vector.broadcast %55 : vector<16x1xf32> to vector<16x16xf32>
    %57 = arith.mulf %52, %56 : vector<16x16xf32>
    %cst_22 = arith.constant dense<0.000000e+00> : vector<16x8xf32>
    %58 = tpu.matmul %57, %45, %cst_22 {dimension_numbers = #tpu.dot_dimension_numbers<[1], [0], [0], [1], [0, 0, 1, 1], [], []>} : vector<16x16xf32>, vector<16x8xf32>, vector<16x8xf32> -> vector<16x8xf32>
    %c0_23 = arith.constant 0 : index
    %c0_24 = arith.constant 0 : index
    %59 = vector.load %arg8[%c0_23, %c0_24] : memref<32x32xf32, #tpu.memory_space<vmem>>, vector<8x32xf32>
    %cst_25 = arith.constant dense<0.000000e+00> : vector<16x32xf32>
    %60 = tpu.matmul %58, %59, %cst_25 {dimension_numbers = #tpu.dot_dimension_numbers<[1], [0], [0], [1], [0, 0, 1, 1], [], []>} : vector<16x8xf32>, vector<8x32xf32>, vector<16x32xf32> -> vector<16x32xf32>
    %61 = arith.addf %40, %60 : vector<16x32xf32>
    %62 = vector.extract_strided_slice %29 {offsets = [0, 8], sizes = [16, 8], strides = [1, 1]} : vector<16x96xf32> to vector<16x8xf32>
    %cst_26 = arith.constant 0.353553385 : f32
    %63 = vector.broadcast %cst_26 : f32 to vector<16x8xf32>
    %64 = arith.mulf %62, %63 : vector<16x8xf32>
    %65 = vector.extract_strided_slice %29 {offsets = [0, 40], sizes = [16, 8], strides = [1, 1]} : vector<16x96xf32> to vector<16x8xf32>
    %66 = vector.extract_strided_slice %29 {offsets = [0, 72], sizes = [16, 8], strides = [1, 1]} : vector<16x96xf32> to vector<16x8xf32>
    %cst_27 = arith.constant dense<0.000000e+00> : vector<16x16xf32>
    %67 = tpu.matmul %64, %65, %cst_27 {dimension_numbers = #tpu.dot_dimension_numbers<[1], [1], [0], [0], [0, 0, 1, 0], [], []>} : vector<16x8xf32>, vector<16x8xf32>, vector<16x16xf32> -> vector<16x16xf32>
    %68 = arith.addf %67, %39 : vector<16x16xf32>
    %cst_28 = arith.constant dense<0xFF800000> : vector<16xf32>
    %69 = vector.multi_reduction <maximumf>, %68, %cst_28 [1] : vector<16x16xf32> to vector<16xf32>
    %70 = vector.shape_cast %69 : vector<16xf32> to vector<16x1xf32>
    %71 = vector.broadcast %70 : vector<16x1xf32> to vector<16x16xf32>
    %72 = arith.subf %68, %71 : vector<16x16xf32>
    %73 = math.exp %72 : vector<16x16xf32>
    %cst_29 = arith.constant dense<0.000000e+00> : vector<16xf32>
    %74 = vector.multi_reduction <add>, %73, %cst_29 [1] : vector<16x16xf32> to vector<16xf32>
    %75 = vector.shape_cast %74 : vector<16xf32> to vector<16x1xf32>
    %76 = tpu.reciprocal %75 {approx = true} : vector<16x1xf32> -> vector<16x1xf32>
    %77 = vector.broadcast %76 : vector<16x1xf32> to vector<16x16xf32>
    %78 = arith.mulf %73, %77 : vector<16x16xf32>
    %cst_30 = arith.constant dense<0.000000e+00> : vector<16x8xf32>
    %79 = tpu.matmul %78, %66, %cst_30 {dimension_numbers = #tpu.dot_dimension_numbers<[1], [0], [0], [1], [0, 0, 1, 1], [], []>} : vector<16x16xf32>, vector<16x8xf32>, vector<16x8xf32> -> vector<16x8xf32>
    %c8 = arith.constant 8 : index
    %c0_31 = arith.constant 0 : index
    %80 = vector.load %arg8[%c8, %c0_31] : memref<32x32xf32, #tpu.memory_space<vmem>>, vector<8x32xf32>
    %cst_32 = arith.constant dense<0.000000e+00> : vector<16x32xf32>
    %81 = tpu.matmul %79, %80, %cst_32 {dimension_numbers = #tpu.dot_dimension_numbers<[1], [0], [0], [1], [0, 0, 1, 1], [], []>} : vector<16x8xf32>, vector<8x32xf32>, vector<16x32xf32> -> vector<16x32xf32>
    %82 = arith.addf %61, %81 : vector<16x32xf32>
    %83 = vector.extract_strided_slice %29 {offsets = [0, 16], sizes = [16, 8], strides = [1, 1]} : vector<16x96xf32> to vector<16x8xf32>
    %cst_33 = arith.constant 0.353553385 : f32
    %84 = vector.broadcast %cst_33 : f32 to vector<16x8xf32>
    %85 = arith.mulf %83, %84 : vector<16x8xf32>
    %86 = vector.extract_strided_slice %29 {offsets = [0, 48], sizes = [16, 8], strides = [1, 1]} : vector<16x96xf32> to vector<16x8xf32>
    %87 = vector.extract_strided_slice %29 {offsets = [0, 80], sizes = [16, 8], strides = [1, 1]} : vector<16x96xf32> to vector<16x8xf32>
    %cst_34 = arith.constant dense<0.000000e+00> : vector<16x16xf32>
    %88 = tpu.matmul %85, %86, %cst_34 {dimension_numbers = #tpu.dot_dimension_numbers<[1], [1], [0], [0], [0, 0, 1, 0], [], []>} : vector<16x8xf32>, vector<16x8xf32>, vector<16x16xf32> -> vector<16x16xf32>
    %89 = arith.addf %88, %39 : vector<16x16xf32>
    %cst_35 = arith.constant dense<0xFF800000> : vector<16xf32>
    %90 = vector.multi_reduction <maximumf>, %89, %cst_35 [1] : vector<16x16xf32> to vector<16xf32>
    %91 = vector.shape_cast %90 : vector<16xf32> to vector<16x1xf32>
    %92 = vector.broadcast %91 : vector<16x1xf32> to vector<16x16xf32>
    %93 = arith.subf %89, %92 : vector<16x16xf32>
    %94 = math.exp %93 : vector<16x16xf32>
    %cst_36 = arith.constant dense<0.000000e+00> : vector<16xf32>
    %95 = vector.multi_reduction <add>, %94, %cst_36 [1] : vector<16x16xf32> to vector<16xf32>
    %96 = vector.shape_cast %95 : vector<16xf32> to vector<16x1xf32>
    %97 = tpu.reciprocal %96 {approx = true} : vector<16x1xf32> -> vector<16x1xf32>
    %98 = vector.broadcast %97 : vector<16x1xf32> to vector<16x16xf32>
    %99 = arith.mulf %94, %98 : vector<16x16xf32>
    %cst_37 = arith.constant dense<0.000000e+00> : vector<16x8xf32>
    %100 = tpu.matmul %99, %87, %cst_37 {dimension_numbers = #tpu.dot_dimension_numbers<[1], [0], [0], [1], [0, 0, 1, 1], [], []>} : vector<16x16xf32>, vector<16x8xf32>, vector<16x8xf32> -> vector<16x8xf32>
    %c16 = arith.constant 16 : index
    %c0_38 = arith.constant 0 : index
    %101 = vector.load %arg8[%c16, %c0_38] : memref<32x32xf32, #tpu.memory_space<vmem>>, vector<8x32xf32>
    %cst_39 = arith.constant dense<0.000000e+00> : vector<16x32xf32>
    %102 = tpu.matmul %100, %101, %cst_39 {dimension_numbers = #tpu.dot_dimension_numbers<[1], [0], [0], [1], [0, 0, 1, 1], [], []>} : vector<16x8xf32>, vector<8x32xf32>, vector<16x32xf32> -> vector<16x32xf32>
    %103 = arith.addf %82, %102 : vector<16x32xf32>
    %104 = vector.extract_strided_slice %29 {offsets = [0, 24], sizes = [16, 8], strides = [1, 1]} : vector<16x96xf32> to vector<16x8xf32>
    %cst_40 = arith.constant 0.353553385 : f32
    %105 = vector.broadcast %cst_40 : f32 to vector<16x8xf32>
    %106 = arith.mulf %104, %105 : vector<16x8xf32>
    %107 = vector.extract_strided_slice %29 {offsets = [0, 56], sizes = [16, 8], strides = [1, 1]} : vector<16x96xf32> to vector<16x8xf32>
    %108 = vector.extract_strided_slice %29 {offsets = [0, 88], sizes = [16, 8], strides = [1, 1]} : vector<16x96xf32> to vector<16x8xf32>
    %cst_41 = arith.constant dense<0.000000e+00> : vector<16x16xf32>
    %109 = tpu.matmul %106, %107, %cst_41 {dimension_numbers = #tpu.dot_dimension_numbers<[1], [1], [0], [0], [0, 0, 1, 0], [], []>} : vector<16x8xf32>, vector<16x8xf32>, vector<16x16xf32> -> vector<16x16xf32>
    %110 = arith.addf %109, %39 : vector<16x16xf32>
    %cst_42 = arith.constant dense<0xFF800000> : vector<16xf32>
    %111 = vector.multi_reduction <maximumf>, %110, %cst_42 [1] : vector<16x16xf32> to vector<16xf32>
    %112 = vector.shape_cast %111 : vector<16xf32> to vector<16x1xf32>
    %113 = vector.broadcast %112 : vector<16x1xf32> to vector<16x16xf32>
    %114 = arith.subf %110, %113 : vector<16x16xf32>
    %115 = math.exp %114 : vector<16x16xf32>
    %cst_43 = arith.constant dense<0.000000e+00> : vector<16xf32>
    %116 = vector.multi_reduction <add>, %115, %cst_43 [1] : vector<16x16xf32> to vector<16xf32>
    %117 = vector.shape_cast %116 : vector<16xf32> to vector<16x1xf32>
    %118 = tpu.reciprocal %117 {approx = true} : vector<16x1xf32> -> vector<16x1xf32>
    %119 = vector.broadcast %118 : vector<16x1xf32> to vector<16x16xf32>
    %120 = arith.mulf %115, %119 : vector<16x16xf32>
    %cst_44 = arith.constant dense<0.000000e+00> : vector<16x8xf32>
    %121 = tpu.matmul %120, %108, %cst_44 {dimension_numbers = #tpu.dot_dimension_numbers<[1], [0], [0], [1], [0, 0, 1, 1], [], []>} : vector<16x16xf32>, vector<16x8xf32>, vector<16x8xf32> -> vector<16x8xf32>
    %c24 = arith.constant 24 : index
    %c0_45 = arith.constant 0 : index
    %122 = vector.load %arg8[%c24, %c0_45] : memref<32x32xf32, #tpu.memory_space<vmem>>, vector<8x32xf32>
    %cst_46 = arith.constant dense<0.000000e+00> : vector<16x32xf32>
    %123 = tpu.matmul %121, %122, %cst_46 {dimension_numbers = #tpu.dot_dimension_numbers<[1], [0], [0], [1], [0, 0, 1, 1], [], []>} : vector<16x8xf32>, vector<8x32xf32>, vector<16x32xf32> -> vector<16x32xf32>
    %124 = arith.addf %103, %123 : vector<16x32xf32>
    %c0_47 = arith.constant 0 : index
    %c0_48 = arith.constant 0 : index
    %125 = vector.load %arg9[%c0_47, %c0_48] : memref<1x32xf32, #tpu.memory_space<vmem>>, vector<1x32xf32>
    %126 = vector.broadcast %125 : vector<1x32xf32> to vector<16x32xf32>
    %127 = arith.addf %124, %126 : vector<16x32xf32>
    %128 = arith.addf %0, %127 : vector<16x32xf32>
    %c0_49 = arith.constant 0 : index
    %c0_50 = arith.constant 0 : index
    %129 = vector.load %arg4[%c0_49, %c0_50] : memref<1x32xf32, #tpu.memory_space<vmem>>, vector<1x32xf32>
    %c0_51 = arith.constant 0 : index
    %c0_52 = arith.constant 0 : index
    %130 = vector.load %arg5[%c0_51, %c0_52] : memref<1x32xf32, #tpu.memory_space<vmem>>, vector<1x32xf32>
    %cst_53 = arith.constant dense<0.000000e+00> : vector<16xf32>
    %131 = vector.multi_reduction <add>, %128, %cst_53 [1] : vector<16x32xf32> to vector<16xf32>
    %132 = vector.shape_cast %131 : vector<16xf32> to vector<16x1xf32>
    %cst_54 = arith.constant 3.200000e+01 : f32
    %133 = vector.broadcast %cst_54 : f32 to vector<16x1xf32>
    %134 = arith.divf %132, %133 : vector<16x1xf32>
    %135 = vector.broadcast %134 : vector<16x1xf32> to vector<16x32xf32>
    %136 = arith.subf %128, %135 : vector<16x32xf32>
    %137 = arith.mulf %136, %136 : vector<16x32xf32>
    %cst_55 = arith.constant dense<0.000000e+00> : vector<16xf32>
    %138 = vector.multi_reduction <add>, %137, %cst_55 [1] : vector<16x32xf32> to vector<16xf32>
    %139 = vector.shape_cast %138 : vector<16xf32> to vector<16x1xf32>
    %cst_56 = arith.constant 3.200000e+01 : f32
    %140 = vector.broadcast %cst_56 : f32 to vector<16x1xf32>
    %141 = arith.divf %139, %140 : vector<16x1xf32>
    %142 = vector.broadcast %134 : vector<16x1xf32> to vector<16x32xf32>
    %143 = arith.subf %128, %142 : vector<16x32xf32>
    %cst_57 = arith.constant 9.99999996E-13 : f32
    %144 = vector.broadcast %cst_57 : f32 to vector<16x1xf32>
    %145 = arith.addf %141, %144 : vector<16x1xf32>
    %146 = math.rsqrt %145 : vector<16x1xf32>
    %147 = vector.broadcast %146 : vector<16x1xf32> to vector<16x32xf32>
    %148 = arith.mulf %143, %147 : vector<16x32xf32>
    %149 = vector.broadcast %129 : vector<1x32xf32> to vector<16x32xf32>
    %150 = arith.mulf %149, %148 : vector<16x32xf32>
    %151 = vector.broadcast %130 : vector<1x32xf32> to vector<16x32xf32>
    %152 = arith.addf %150, %151 : vector<16x32xf32>
    %c0_58 = arith.constant 0 : index
    %c0_59 = arith.constant 0 : index
    %153 = vector.load %arg10[%c0_58, %c0_59] : memref<32x128xf32, #tpu.memory_space<vmem>>, vector<32x128xf32>
    %cst_60 = arith.constant dense<0.000000e+00> : vector<16x128xf32>
    %154 = tpu.matmul %152, %153, %cst_60 {dimension_numbers = #tpu.dot_dimension_numbers<[1], [0], [0], [1], [0, 0, 1, 1], [], []>} : vector<16x32xf32>, vector<32x128xf32>, vector<16x128xf32> -> vector<16x128xf32>
    %c0_61 = arith.constant 0 : index
    %c0_62 = arith.constant 0 : index
    %155 = vector.load %arg11[%c0_61, %c0_62] : memref<1x128xf32, #tpu.memory_space<vmem>>, vector<1x128xf32>
    %156 = vector.broadcast %155 : vector<1x128xf32> to vector<16x128xf32>
    %157 = arith.addf %154, %156 : vector<16x128xf32>
    %cst_63 = arith.constant 1.702000e+00 : f32
    %158 = vector.broadcast %cst_63 : f32 to vector<16x128xf32>
    %159 = arith.mulf %158, %157 : vector<16x128xf32>
    %160 = arith.negf %159 : vector<16x128xf32>
    %161 = math.exp %160 : vector<16x128xf32>
    %cst_64 = arith.constant 1.000000e+00 : f32
    %162 = vector.broadcast %cst_64 : f32 to vector<16x128xf32>
    %163 = arith.addf %162, %161 : vector<16x128xf32>
    %164 = arith.divf %162, %163 : vector<16x128xf32>
    %165 = arith.mulf %157, %164 : vector<16x128xf32>
    %c0_65 = arith.constant 0 : index
    %c0_66 = arith.constant 0 : index
    %166 = vector.load %arg12[%c0_65, %c0_66] : memref<128x32xf32, #tpu.memory_space<vmem>>, vector<128x32xf32>
    %cst_67 = arith.constant dense<0.000000e+00> : vector<16x32xf32>
    %167 = tpu.matmul %165, %166, %cst_67 {dimension_numbers = #tpu.dot_dimension_numbers<[1], [0], [0], [1], [0, 0, 1, 1], [], []>} : vector<16x128xf32>, vector<128x32xf32>, vector<16x32xf32> -> vector<16x32xf32>
    %c0_68 = arith.constant 0 : index
    %c0_69 = arith.constant 0 : index
    %168 = vector.load %arg13[%c0_68, %c0_69] : memref<1x32xf32, #tpu.memory_space<vmem>>, vector<1x32xf32>
    %169 = vector.broadcast %168 : vector<1x32xf32> to vector<16x32xf32>
    %170 = arith.addf %167, %169 : vector<16x32xf32>
    %171 = arith.addf %128, %170 : vector<16x32xf32>
    %c0_70 = arith.constant 0 : index
    %c0_71 = arith.constant 0 : index
    %172 = vector.load %arg14[%c0_70, %c0_71] : memref<16x32xf32, #tpu.memory_space<vmem>>, vector<16x32xf32>
    tpu.vector_store %arg14[%c0_70, %c0_71], %171 {strides = array<i32>} : memref<16x32xf32, #tpu.memory_space<vmem>>, vector<16x32xf32>,
    return
  }
  func.func @transform_0(%arg0: i32) -> (i32, i32) {
    %c0_i32 = arith.constant 0 : i32
    %c0_i32_0 = arith.constant 0 : i32
    %c0_i32_1 = arith.constant 0 : i32
    return %c0_i32, %c0_i32_0 : i32, i32
  }
  func.func @transform_1(%arg0: i32) -> (i32, i32) {
    %c0_i32 = arith.constant 0 : i32
    %c0_i32_0 = arith.constant 0 : i32
    %c0_i32_1 = arith.constant 0 : i32
    return %c0_i32, %c0_i32_0 : i32, i32
  }
  func.func @transform_2(%arg0: i32) -> (i32, i32) {
    %c0_i32 = arith.constant 0 : i32
    %c0_i32_0 = arith.constant 0 : i32
    %c0_i32_1 = arith.constant 0 : i32
    return %c0_i32, %c0_i32_0 : i32, i32
  }
  func.func @transform_3(%arg0: i32) -> (i32, i32) {
    %c0_i32 = arith.constant 0 : i32
    %c0_i32_0 = arith.constant 0 : i32
    %c0_i32_1 = arith.constant 0 : i32
    return %c0_i32, %c0_i32_0 : i32, i32
  }
  func.func @transform_4(%arg0: i32) -> (i32, i32) {
    %c0_i32 = arith.constant 0 : i32
    %c0_i32_0 = arith.constant 0 : i32
    %c0_i32_1 = arith.constant 0 : i32
    return %c0_i32, %c0_i32_0 : i32, i32
  }
  func.func @transform_5(%arg0: i32) -> (i32, i32) {
    %c0_i32 = arith.constant 0 : i32
    %c0_i32_0 = arith.constant 0 : i32
    %c0_i32_1 = arith.constant 0 : i32
    return %c0_i32, %c0_i32_0 : i32, i32
  }
  func.func @transform_6(%arg0: i32) -> (i32, i32) {
    %c0_i32 = arith.constant 0 : i32
    %c0_i32_0 = arith.constant 0 : i32
    %c0_i32_1 = arith.constant 0 : i32
    return %c0_i32, %c0_i32_0 : i32, i32
  }
  func.func @transform_7(%arg0: i32) -> (i32, i32) {
    %c0_i32 = arith.constant 0 : i32
    %c0_i32_0 = arith.constant 0 : i32
    %c0_i32_1 = arith.constant 0 : i32
    return %c0_i32, %c0_i32_0 : i32, i32
  }
  func.func @transform_8(%arg0: i32) -> (i32, i32) {
    %c0_i32 = arith.constant 0 : i32
    %c0_i32_0 = arith.constant 0 : i32
    %c0_i32_1 = arith.constant 0 : i32
    return %c0_i32, %c0_i32_0 : i32, i32
  }
  func.func @transform_9(%arg0: i32) -> (i32, i32) {
    %c0_i32 = arith.constant 0 : i32
    %c0_i32_0 = arith.constant 0 : i32
    %c0_i32_1 = arith.constant 0 : i32
    return %c0_i32, %c0_i32_0 : i32, i32
  }
  func.func @transform_10(%arg0: i32) -> (i32, i32) {
    %c0_i32 = arith.constant 0 : i32
    %c0_i32_0 = arith.constant 0 : i32
    %c0_i32_1 = arith.constant 0 : i32
    return %c0_i32, %c0_i32_0 : i32, i32
  }
  func.func @transform_11(%arg0: i32) -> (i32, i32) {
    %c0_i32 = arith.constant 0 : i32
    %c0_i32_0 = arith.constant 0 : i32
    %c0_i32_1 = arith.constant 0 : i32
    return %c0_i32, %c0_i32_0 : i32, i32
  }
  func.func @transform_12(%arg0: i32) -> (i32, i32) {
    %c0_i32 = arith.constant 0 : i32
    %c0_i32_0 = arith.constant 0 : i32
    %c0_i32_1 = arith.constant 0 : i32
    return %c0_i32, %c0_i32_0 : i32, i32
  }
  func.func @transform_13(%arg0: i32) -> (i32, i32) {
    %c0_i32 = arith.constant 0 : i32
    %c0_i32_0 = arith.constant 0 : i32
    %c0_i32_1 = arith.constant 0 : i32
    return %c0_i32, %c0_i32_0 : i32, i32
  }
}

</mosaic_0001>

<bundles_post_ra>
// kernel: tpu_custom_call.1
= control target key start
LH: loop header
LB: loop body
LE: loop exit
PB: predicated region body
PF: predicated region fallthrough
CT: control target
= control target key end

     0   :  { %vm49_vm0 = vcmask 261120   ;;  %s2435_s0 = inlined_call_operand.vmem [shape: f32[16,32], index: 0, kind: input, shape index: {}]   ;;  %s2436_s1 = inlined_call_operand.vmem [shape: f32[1,32], index: 1, kind: input, shape index: {}]   ;;  %s2437_s2 = inlined_call_operand.vmem [shape: f32[1,32], index: 2, kind: input, shape index: {}]   ;;  %s2438_s3 = inlined_call_operand.vmem [shape: f32[1,32], index: 3, kind: input, shape index: {}]   ;;  %s2439_s4 = inlined_call_operand.vmem [shape: f32[1,32], index: 4, kind: input, shape index: {}]   ;;  %s2440_s5 = inlined_call_operand.vmem [shape: f32[32,96], index: 5, kind: input, shape index: {}]   ;;  %s2441_s6 = inlined_call_operand.vmem [shape: f32[1,96], index: 6, kind: input, shape index: {}]   ;;  %s2442_s7 = inlined_call_operand.vmem [shape: f32[32,32], index: 7, kind: input, shape index: {}]   ;;  %s2443_s8 = inlined_call_operand.vmem [shape: f32[1,32], index: 8, kind: input, shape index: {}]   ;;  %s2444_s9 = inlined_call_operand.vmem [shape: f32[32,128], index: 9, kind: input, shape index: {}]   ;;  %s2445_s10 = inlined_call_operand.vmem [shape: f32[1,128], index: 10, kind: input, shape index: {}]   ;;  %s2446_s11 = inlined_call_operand.vmem [shape: f32[128,32], index: 11, kind: input, shape index: {}]   ;;  %s2447_s12 = inlined_call_operand.vmem [shape: f32[1,32], index: 12, kind: input, shape index: {}]   ;;  %s2448_s13 = inlined_call_operand.hbm [shape: f32[16,32], index: 13, kind: output, shape index: {}]  }
   0x1   :  { %v2176_v0 = vld [vmem:[%s2435_s0] sm:$0xff]  ;;  %v2181_v1 = vld [vmem:[%s2435_s0 + $0x8] sm:$0xff] }
   0x2   :  { %18 = vsyncpa [#allocation3], 0  ;;  %v50_v2 = vsel %vm49_vm0, %v2176_v0, 0.0  ;;  %v53_v3 = vsel %vm49_vm0, %v2181_v1, 0.0  ;;  %v93_v14 = vld [vmem:[%s2440_s5] sm:$0xff]  ;;  %v94_v15 = vld [vmem:[%s2440_s5 + $0x8] sm:$0xff]  ;;  %v185_v49 = vlaneseq }
   0x3   :  { %51 = vadd.xlane.f32.xlu0 %v50_v2  ;;  %v95_v16 = vld [vmem:[%s2440_s5 + $0x10] sm:$0xff]  ;;  %v1867_v17 = vpack.c.bf16 %v94_v15, %v93_v14  ;;  %v96_v18 = vld [vmem:[%s2440_s5 + $0x18] sm:$0xff]  ;;  %v1614_v27 = vld [vmem:[%s2436_s1] ss:$0 sm:$0xff]  ;;  %vm205_vm1 = vcmask 64512   ;;  %s2088_s1 = smov 96  }
   0x4   :  { %v1871_v19 = vpack.c.bf16 %v96_v18, %v95_v16  ;;  %v1615_v29 = vld [vmem:[%s2437_s2] ss:$0 sm:$0xff]  ;;  %s2089_s2 = smov 88   ;;  %s2090_s24 = smov 120   ;;  %vm2228_vm2 = vmpackc.low %vm205_vm1, %vm205_vm1  ;;  %v186_v50 = vshrl.u32 %v185_v49, 7  ;;  %v189_v51 = vand.u32 127, %v185_v49 }
   0x5   :  { %1868 = vmatprep.subr.bf16.mxu1 %v1867_v17  ;;  %v1616_v36 = vld [vmem:[%s2441_s6] ss:$0 sm:$0xff]  ;;  %v2091_v56 = vmov -1e+30   ;;  %vm291_vm5 = vcmask 130048   ;;  %s2092_s6 = smov 64  }
   0x6   :  { %1870 = vmatpush3.bf16.msra.mxu1 %v1867_v17  ;;  %v187_v52 = vadd.s32 8, %v186_v50  ;;  %v192_v53 = vand.u32 1, %v189_v51  ;;  %v190_v54 = vand.u32 1, %v186_v50  ;;  %s2093_s25 = smov 56   ;;  %s2094_s26 = smov 112  }
   0x7   :  { %54 = vadd.xlane.f32.xlu0 %v53_v3  ;;  %1872 = vmatprep.subr.bf16.mxu1 %v1871_v19  ;;  %s2095_s27 = smov 72   ;;  %s2096_s28 = smov 104  }
   0x8   :  { %v191_v55 = vand.u32 1, %v187_v52  ;;  %vm193_vm3 = vcmp.eq.s32.totalorder %v190_v54, %v192_v53  ;;  %s2097_s0 = smov 80   ;;  %s2098_s16 = smov 48  }
   0x9   :  { %v2238_v57 = vsel %vm193_vm3, 0.0, %v2091_v56  ;;  %s2099_s17 = smov 40  }
   0xa   :  { %1874 = vmatpush3.bf16.msra.mxu1 %v1871_v19  ;;  %vm194_vm4 = vcmp.eq.s32.totalorder %v191_v55, %v192_v53 }
   0xb   :  { %v2240_v59 = vsel %vm194_vm4, 0.0, %v2091_v56 }
  0x90   :  { %v52_v4 = vpop.xlane.xlu0 %51 }
  0x91   :  { %v57_v5 = vmul.f32 0.03125, %v52_v4 }
  0x93   :  { %v59_v6 = vsub.f32 %v2176_v0, %v57_v5 }
  0x94   :  { %v55_v7 = vpop.xlane.xlu0 %54 }
  0x95   :  { %v58_v8 = vmul.f32 0.03125, %v55_v7  ;;  %v61_v9 = vmul.f32 %v59_v6, %v59_v6 }
  0x97   :  { %v60_v10 = vsub.f32 %v2181_v1, %v58_v8  ;;  %v63_v11 = vsel %vm49_vm0, %v61_v9, 0.0 }
  0x98   :  { %64 = vadd.xlane.f32.xlu1 %v63_v11 }
  0x99   :  { %v62_v12 = vmul.f32 %v60_v10, %v60_v10 }
  0x9b   :  { %v66_v13 = vsel %vm49_vm0, %v62_v12, 0.0 }
  0x9c   :  { %67 = vadd.xlane.f32.xlu1 %v66_v13 }
 0x125   :  { %v65_v20 = vpop.xlane.xlu1 %64 }
 0x126   :  { %v69_v21 = vmul.f32 0.03125, %v65_v20 }
 0x128   :  { %v71_v22 = vadd.f32 1e-12, %v69_v21 }
 0x129   :  { %v68_v23 = vpop.xlane.xlu1 %67 }
 0x12a   :  { %2016 = vrsqrt.f32 %v71_v22  ;;  %v70_v24 = vmul.f32 0.03125, %v68_v23 }
 0x12c   :  { %v72_v25 = vadd.f32 1e-12, %v70_v24 }
 0x12e   :  { %2018 = vrsqrt.f32 %v72_v25 }
 0x134   :  { %v2017_v26 = vpop.eup %2016 }
 0x135   :  { %v75_v28 = vmul.f32 %v2017_v26, %v59_v6 }
 0x137   :  { %v83_v30 = vmul.f32 %v1614_v27, %v75_v28 }
 0x138   :  { %v2019_v31 = vpop.eup %2018 }
 0x139   :  { %v76_v32 = vmul.f32 %v2019_v31, %v60_v10  ;;  %v91_v33 = vadd.f32 %v1615_v29, %v83_v30 }
 0x13b   :  { %v84_v34 = vmul.f32 %v1614_v27, %v76_v32  ;;  %1742 = vmatprep.mubr.msk.f32.mxu1 %vm49_vm0, %v91_v33 }
 0x13d   :  { %v92_v35 = vadd.f32 %v1615_v29, %v84_v34 }
 0x13f   :  { %1743 = vmatmul.mubr.msk.f32.vlgmr.msra.gmra.mrb[0].mxu1 %vm49_vm0, %v92_v35 }
 0x212   :  { %v1744_v37 = vpop.f32.mrb[0].mxu1 }
 0x213   :  { %v182_v38 = vadd.f32 %v1744_v37, %v1616_v36  ;;  %v176_v39 = vpop.f32.mrb[1].mxu1 }
 0x214   :  { %v177_v40 = vadd.f32 %v1616_v36, %v176_v39 }
 0x215   :  { %v2223_v43 = vmul.f32 0.35355338, %v182_v38 }
 0x216   :  { %v2214_v41 = vpack.i.bf16 %v182_v38, %v177_v40  ;;  %v2216_v42 = vmul.f32 0.35355338, %v177_v40 }
 0x218   :  { %1977 = vrot.lane.b32.xlu0 %v2214_v41, %s2088_s1  ;;  %1749 = vmatprep.mubr.msk.f32.mxu1 %vm205_vm1, %v2216_v42 }
 0x21c   :  { %1987 = vrot.lane.b32.xlu0 %v2214_v41, %s2089_s2 }
 0x220   :  { %402 = vrot.lane.b32.xlu0 %v2216_v42, %s2090_s24 }
 0x224   :  { %404 = vrot.lane.b32.xlu0 %v2223_v43, %s2090_s24 }
 0x28a   :  { %v1978_v44 = vpop.permute.xlu0 %1977 }
 0x28b   :  { %v1980_v45 = vunpack.i.h.bf16 %v1978_v44  ;;  %v1979_v46 = vunpack.i.l.bf16 %v1978_v44 }
 0x28d   :  { %v1875_v48 = vpack.c.bf16 %v1980_v45, %v1979_v46 }
 0x28e   :  { %v1988_v15 = vpop.permute.xlu0 %1987 }
 0x28f   :  { %1877 = vmatprep.subr.msk.bf16.mxu1 %vm2228_vm2, %v1875_v48  ;;  %v1990_v17 = vunpack.i.h.bf16 %v1988_v15  ;;  %v1989_v18 = vunpack.i.l.bf16 %v1988_v15 }
 0x290   :  { %1880 = vmatpush3.bf16.xpose.msk.msra.mxu1 %vm2228_vm2, %v1875_v48 }
 0x291   :  { %v1885_v22 = vpack.c.bf16 %v1990_v17, %v1989_v18 }
 0x292   :  { %v403_v27 = vpop.permute.xlu0 %402 }
 0x296   :  { %v405_v28 = vpop.permute.xlu0 %404 }
 0x297   :  { %1750 = vmatmul.mubr.msk.f32.vlgmr.msra.gmra.mrb[2].mxu1 %vm205_vm1, %v2223_v43 }
 0x36a   :  { %v1751_v58 = vpop.f32.mrb[2].mxu1 }
 0x36b   :  { %v282_v60 = vpop.f32.mrb[3].mxu1  ;;  %v288_v62 = vadd.f32 %v1751_v58, %v2240_v59 }
 0x36c   :  { %v283_v61 = vadd.f32 %v282_v60, %v2238_v57 }
 0x36d   :  { %v295_v2 = vsel %vm291_vm5, %v288_v62, -inf }
 0x36e   :  { %v292_v63 = vsel %vm291_vm5, %v283_v61, -inf }
 0x36f   :  { %293 = vmax.xlane.f32.xlu1 %v292_v63 }
 0x373   :  { %296 = vmax.xlane.f32.xlu1 %v295_v2 }
 0x3fc   :  { %v294_v3 = vpop.xlane.xlu1 %293 }
 0x3fd   :  { %v298_v4 = vsub.f32 %v283_v61, %v294_v3 }
 0x3ff   :  { %v300_v7 = vmul.f32 1.442695, %v298_v4 }
 0x400   :  { %v297_v5 = vpop.xlane.xlu1 %296 }
 0x401   :  { %v299_v6 = vsub.f32 %v288_v62, %v297_v5 }
 0x403   :  { %v302_v8 = vmul.f32 1.442695, %v299_v6 }
 0x405   :  { %2020 = vpow2.f32 %v302_v8 }
 0x406   :  { %2022 = vpow2.f32 %v300_v7 }
 0x40f   :  { %v2021_v9 = vpop.eup %2020 }
 0x410   :  { %v307_v10 = vsel %vm291_vm5, %v2021_v9, 0.0  ;;  %v2023_v11 = vpop.eup %2022 }
 0x411   :  { %308 = vadd.xlane.f32.xlu1 %v307_v10  ;;  %v304_v12 = vsel %vm291_vm5, %v2023_v11, 0.0 }
 0x415   :  { %305 = vadd.xlane.f32.xlu1 %v304_v12  ;;  %v401_v12 = vld [vmem:[%s2442_s7] sm:$0xff] }
 0x426   :  { %1982 = vrot.lane.b32.xlu1 %v2214_v41, %s2092_s6 }
 0x49e   :  { %v309_v13 = vpop.xlane.xlu1 %308 }
 0x49f   :  { %2024 = vrcp.f32 %v309_v13 }
 0x4a2   :  { %v306_v14 = vpop.xlane.xlu1 %305 }
 0x4a3   :  { %2026 = vrcp.f32 %v306_v14 }
 0x4a6   :  { %v1983_v16 = vpop.permute.xlu1 %1982 }
 0x4a7   :  { %v1985_v19 = vunpack.i.h.bf16 %v1983_v16  ;;  %v1984_v20 = vunpack.i.l.bf16 %v1983_v16 }
 0x4a9   :  { %v1881_v21 = vpack.c.bf16 %v1985_v19, %v1984_v20  ;;  %v2025_v23 = vpop.eup %2024 }
 0x4aa   :  { %v313_v26 = vmul.f32 %v2025_v23, %v2021_v9 }
 0x4ab   :  { %1882 = vmatprep.subr.bf16.mxu1 %v1881_v21 }
 0x4ac   :  { %1884 = vmatpush3.bf16.msra.mxu1 %v1881_v21 }
 0x4ad   :  { %v2027_v24 = vpop.eup %2026  ;;  %1887 = vmatprep.subr.msk.bf16.mxu1 %vm2228_vm2, %v1885_v22 }
 0x4ae   :  { %v312_v25 = vmul.f32 %v2027_v24, %v2023_v11  ;;  %v602_v11 = vld [vmem:[%s2442_s7 + $0x8] sm:$0xff] }
 0x4af   :  { %1773 = vmatprep.subr.mxu0 %v602_v11 }
 0x4b0   :  { %1756 = vmatprep.mubr.msk.f32.mxu1 %vm291_vm5, %v312_v25  ;;  %1774 = vmatpush3.msra.mxu0 %v602_v11  ;;  %v1651_v11 = vld [vmem:[%s2443_s8] ss:$0 sm:$0xff] }
 0x4b1   :  { %1757 = vmatmul.mubr.msk.f32.vlgmr.msra.gmra.mrb[4].mxu1 %vm291_vm5, %v313_v26  ;;  %1778 = vmatprep.subr.mxu0 %v401_v12 }
 0x4b2   :  { %1763 = vmatprep.mubr.msk.f32.mxu1 %vm205_vm1, %v403_v27 }
 0x4b5   :  { %1890 = vmatpush3.bf16.xpose.msk.msra.mxu1 %vm2228_vm2, %v1885_v22 }
 0x4bc   :  { %1764 = vmatmul.mubr.msk.f32.vlgmr.msra.gmra.mrb[6].mxu1 %vm205_vm1, %v405_v28 }
 0x584   :  { %v2257_v29 = vpop.f32.mrb[4].mxu1 }
 0x585   :  { %v2259_v30 = vpop.f32.mrb[5].mxu1 }
 0x58f   :  { %v1765_v31 = vpop.f32.mrb[6].mxu1 }
 0x590   :  { %v490_v32 = vadd.f32 %v1765_v31, %v2240_v59  ;;  %v484_v33 = vpop.f32.mrb[7].mxu1 }
 0x591   :  { %v485_v34 = vadd.f32 %v484_v33, %v2238_v57 }
 0x592   :  { %v496_v35 = vsel %vm291_vm5, %v490_v32, -inf }
 0x593   :  { %497 = vmax.xlane.f32.xlu0 %v496_v35  ;;  %v493_v36 = vsel %vm291_vm5, %v485_v34, -inf }
 0x594   :  { %494 = vmax.xlane.f32.xlu1 %v493_v36 }
 0x5a5   :  { %1992 = vrot.lane.b32.xlu1 %v2214_v41, %s2093_s25 }
 0x5a9   :  { %765 = vrot.lane.b32.xlu1 %v2216_v42, %s2094_s26 }
 0x5ad   :  { %767 = vrot.lane.b32.xlu1 %v2223_v43, %s2094_s26 }
 0x5b1   :  { %2002 = vrot.lane.b32.xlu1 %v2214_v41, %s2095_s27 }
 0x5b5   :  { %1051 = vrot.lane.b32.xlu1 %v2223_v43, %s2096_s28 }
 0x620   :  { %v498_v37 = vpop.xlane.xlu0 %497 }
 0x621   :  { %v500_v38 = vsub.f32 %v490_v32, %v498_v37  ;;  %v495_v39 = vpop.xlane.xlu1 %494 }
 0x622   :  { %v499_v40 = vsub.f32 %v485_v34, %v495_v39 }
 0x623   :  { %v503_v44 = vmul.f32 1.442695, %v500_v38 }
 0x624   :  { %v501_v45 = vmul.f32 1.442695, %v499_v40 }
 0x625   :  { %2028 = vpow2.f32 %v503_v44  ;;  %v1993_v46 = vpop.permute.xlu1 %1992 }
 0x626   :  { %v1995_v48 = vunpack.i.h.bf16 %v1993_v46  ;;  %v1994_v49 = vunpack.i.l.bf16 %v1993_v46  ;;  %2030 = vpow2.f32 %v501_v45 }
 0x628   :  { %v1891_v50 = vpack.c.bf16 %v1995_v48, %v1994_v49 }
 0x629   :  { %v766_v54 = vpop.permute.xlu1 %765 }
 0x62a   :  { %1892 = vmatprep.subr.bf16.mxu1 %v1891_v50 }
 0x62b   :  { %1894 = vmatpush3.bf16.msra.mxu1 %v1891_v50 }
 0x62d   :  { %v768_v58 = vpop.permute.xlu1 %767 }
 0x62f   :  { %v2029_v51 = vpop.eup %2028 }
 0x630   :  { %v508_v52 = vsel %vm291_vm5, %v2029_v51, 0.0  ;;  %v2031_v53 = vpop.eup %2030 }
 0x631   :  { %509 = vadd.xlane.f32.xlu0 %v508_v52  ;;  %v505_v43 = vsel %vm291_vm5, %v2031_v53, 0.0  ;;  %v2003_v2 = vpop.permute.xlu1 %2002 }
 0x632   :  { %v2005_v5 = vunpack.i.h.bf16 %v2003_v2  ;;  %v2004_v6 = vunpack.i.l.bf16 %v2003_v2 }
 0x634   :  { %v1905_v8 = vpack.c.bf16 %v2005_v5, %v2004_v6 }
 0x635   :  { %506 = vadd.xlane.f32.xlu0 %v505_v43  ;;  %v1052_v10 = vpop.permute.xlu1 %1051  ;;  %v965_v43 = vld [vmem:[%s2442_s7 + $0x10] sm:$0xff] }
 0x64b   :  { %1997 = vrot.lane.b32.xlu0 %v2214_v41, %s2097_s0 }
 0x64f   :  { %1049 = vrot.lane.b32.xlu0 %v2216_v42, %s2096_s28 }
 0x6be   :  { %v510_v55 = vpop.xlane.xlu0 %509 }
 0x6bf   :  { %2032 = vrcp.f32 %v510_v55 }
 0x6c2   :  { %v507_v56 = vpop.xlane.xlu0 %506 }
 0x6c3   :  { %2034 = vrcp.f32 %v507_v56 }
 0x6c6   :  { %v1998_v60 = vpop.permute.xlu0 %1997 }
 0x6c7   :  { %v2000_v61 = vunpack.i.h.bf16 %v1998_v60  ;;  %v1999_v62 = vunpack.i.l.bf16 %v1998_v60 }
 0x6c9   :  { %v1895_v63 = vpack.c.bf16 %v2000_v61, %v1999_v62  ;;  %v2033_v3 = vpop.eup %2032 }
 0x6ca   :  { %v514_v42 = vmul.f32 %v2033_v3, %v2029_v51  ;;  %v1050_v9 = vpop.permute.xlu0 %1049 }
 0x6cb   :  { %1897 = vmatprep.subr.msk.bf16.mxu1 %vm2228_vm2, %v1895_v63 }
 0x6cd   :  { %v2035_v4 = vpop.eup %2034 }
 0x6ce   :  { %v513_v7 = vmul.f32 %v2035_v4, %v2031_v53 }
 0x6d0   :  { %1770 = vmatprep.mubr.msk.f32.mxu1 %vm291_vm5, %v513_v7 }
 0x6d1   :  { %1771 = vmatmul.mubr.msk.f32.vlgmr.msra.gmra.mrb[8].mxu1 %vm291_vm5, %v514_v42  ;;  %v1249_v42 = vld [vmem:[%s2442_s7 + $0x18] sm:$0xff] }
 0x6d2   :  { %1900 = vmatpush3.bf16.xpose.msk.msra.mxu1 %vm2228_vm2, %v1895_v63  ;;  %1787 = vmatprep.mubr.msk.f32.mxu1 %vm205_vm1, %v766_v54 }
 0x6d3   :  { %1907 = vmatprep.subr.msk.bf16.mxu1 %vm2228_vm2, %v1905_v8 }
 0x6d9   :  { %1788 = vmatmul.mubr.msk.f32.vlgmr.msra.gmra.mrb[10].mxu1 %vm205_vm1, %v768_v58 }
 0x6da   :  { %1910 = vmatpush3.bf16.xpose.msk.msra.mxu1 %vm2228_vm2, %v1905_v8  ;;  %1806 = vmatprep.mubr.msk.f32.mxu1 %vm205_vm1, %v1050_v9 }
 0x6e1   :  { %1807 = vmatmul.mubr.msk.f32.vlgmr.msra.gmra.mrb[12].mxu1 %vm205_vm1, %v1052_v10 }
 0x7a4   :  { %v1772_v13 = vpop.f32.mrb[8].mxu1 }
 0x7a5   :  { %v593_v14 = vpop.f32.mrb[9].mxu1 }
 0x7a6   :  { %1775 = vmatprep.mubr.msk.f32.mxu0 %vm205_vm1, %v593_v14 }
 0x7a7   :  { %1776 = vmatmul.mubr.msk.f32.vlgmr.msra.gmra.mrb[0].mxu0 %vm205_vm1, %v1772_v13 }
 0x7a8   :  { %1780 = vmatprep.mubr.msk.f32.mxu0 %vm205_vm1, %v2259_v30  ;;  %1779 = vmatpush3.msra.mxu0 %v401_v12 }
 0x7ac   :  { %v1789_v47 = vpop.f32.mrb[10].mxu1 }
 0x7ad   :  { %v853_v15 = vadd.f32 %v1789_v47, %v2240_v59  ;;  %v847_v16 = vpop.f32.mrb[11].mxu1 }
 0x7ae   :  { %v848_v17 = vadd.f32 %v847_v16, %v2238_v57 }
 0x7af   :  { %v859_v18 = vsel %vm291_vm5, %v853_v15, -inf  ;;  %1781 = vmatmul.mubr.msk.f32.vlgmr.msra.gmra.mrb[0].mxu0 %vm205_vm1, %v2257_v29 }
 0x7b0   :  { %860 = vmax.xlane.f32.xlu1 %v859_v18  ;;  %v856_v19 = vsel %vm291_vm5, %v848_v17, -inf }
 0x7b1   :  { %857 = vmax.xlane.f32.xlu0 %v856_v19 }
 0x7b4   :  { %v1808_v20 = vpop.f32.mrb[12].mxu1 }
 0x7b5   :  { %v1131_v21 = vpop.f32.mrb[13].mxu1  ;;  %v1137_v23 = vadd.f32 %v1808_v20, %v2240_v59 }
 0x7b6   :  { %v1132_v22 = vadd.f32 %v1131_v21, %v2238_v57 }
 0x7b7   :  { %v1143_v25 = vsel %vm291_vm5, %v1137_v23, -inf }
 0x7b8   :  { %v1140_v24 = vsel %vm291_vm5, %v1132_v22, -inf }
 0x7b9   :  { %1141 = vmax.xlane.f32.xlu1 %v1140_v24 }
 0x7bd   :  { %1144 = vmax.xlane.f32.xlu1 %v1143_v25 }
 0x83d   :  { %v861_v26 = vpop.xlane.xlu1 %860 }
 0x83e   :  { %v863_v27 = vsub.f32 %v853_v15, %v861_v26  ;;  %v858_v28 = vpop.xlane.xlu0 %857 }
 0x83f   :  { %v862_v29 = vsub.f32 %v848_v17, %v858_v28  ;;  %v1389_v28 = vld [vmem:[%s2444_s9 + $0x8] sm:$0xff] }
 0x840   :  { %v866_v30 = vmul.f32 1.442695, %v863_v27  ;;  %v1388_v27 = vld [vmem:[%s2444_s9] sm:$0xff] }
 0x841   :  { %v864_v31 = vmul.f32 1.442695, %v862_v29  ;;  %v1915_v29 = vpack.c.bf16 %v1389_v28, %v1388_v27  ;;  %v1659_v28 = vld [vmem:[%s2447_s12] ss:$0 sm:$0xff] }
 0x842   :  { %2036 = vpow2.f32 %v866_v30  ;;  %v1390_v30 = vld [vmem:[%s2444_s9 + $0x10] sm:$0xff] }
 0x843   :  { %2038 = vpow2.f32 %v864_v31  ;;  %1916 = vmatprep.subr.bf16.mxu1 %v1915_v29  ;;  %v1391_v31 = vld [vmem:[%s2444_s9 + $0x18] sm:$0xff] }
 0x844   :  { %1918 = vmatpush3.bf16.msra.mxu1 %v1915_v29 }
 0x846   :  { %v1142_v32 = vpop.xlane.xlu1 %1141 }
 0x847   :  { %v1146_v33 = vsub.f32 %v1132_v22, %v1142_v32  ;;  %v1919_v32 = vpack.c.bf16 %v1391_v31, %v1390_v30 }
 0x849   :  { %v1148_v59 = vmul.f32 1.442695, %v1146_v33  ;;  %1920 = vmatprep.subr.bf16.mxu1 %v1919_v32 }
 0x84a   :  { %v1145_v34 = vpop.xlane.xlu1 %1144  ;;  %1922 = vmatpush3.bf16.msra.mxu1 %v1919_v32 }
 0x84b   :  { %v1147_v57 = vsub.f32 %v1137_v23, %v1145_v34 }
 0x84c   :  { %v2037_v35 = vpop.eup %2036 }
 0x84d   :  { %v1150_v36 = vmul.f32 1.442695, %v1147_v57  ;;  %v871_v37 = vsel %vm291_vm5, %v2037_v35, 0.0  ;;  %v2039_v38 = vpop.eup %2038 }
 0x84e   :  { %872 = vadd.xlane.f32.xlu0 %v871_v37  ;;  %v868_v39 = vsel %vm291_vm5, %v2039_v38, 0.0 }
 0x84f   :  { %2040 = vpow2.f32 %v1150_v36 }
 0x850   :  { %2042 = vpow2.f32 %v1148_v59 }
 0x852   :  { %869 = vadd.xlane.f32.xlu0 %v868_v39 }
 0x859   :  { %v2041_v40 = vpop.eup %2040 }
 0x85a   :  { %v1155_v44 = vsel %vm291_vm5, %v2041_v40, 0.0  ;;  %v2043_v45 = vpop.eup %2042 }
 0x85b   :  { %1156 = vadd.xlane.f32.xlu1 %v1155_v44  ;;  %v1152_v46 = vsel %vm291_vm5, %v2043_v45, 0.0 }
 0x85f   :  { %1153 = vadd.xlane.f32.xlu1 %v1152_v46 }
 0x868   :  { %2007 = vrot.lane.b32.xlu0 %v2214_v41, %s2098_s16  ;;  %s2100_s16 = smov [#allocation2]  }
 0x870   :  { %2012 = vrot.lane.b32.xlu1 %v2214_v41, %s2099_s17  ;;  %s1603_s17 = sshll.u32 %s2100_s16, 4  ;;  %s1604_s17 = int_to_ptr.vmem [resolvable:$true] %s1603_s17 }
 0x871   :  { %s2064_s18 = scalar_lea.vmem %s1604_s17, 256  ;;  %p2069_p1 = scmp.lt.s32.totalorder %s1604_s17, %s1604_s17 }
 0x872   :  { %p2065_p0 = scmp.ne.s32.totalorder %s1604_s17, %s2064_s18  ;;  %p2070_p2 = scmp.lt.s32.totalorder %s2064_s18, %s2064_s18 }
 0x874   :  { %p2071_p3 = por %p2070_p2, %p2069_p1 }
 0x876   :  { %p2072_p4 = pnand %p2071_p3, %p2065_p0 }
 0x8db   :  { %v873_v48 = vpop.xlane.xlu0 %872 }
 0x8dc   :  { %2044 = vrcp.f32 %v873_v48 }
 0x8df   :  { %v870_v49 = vpop.xlane.xlu0 %869 }
 0x8e0   :  { %2046 = vrcp.f32 %v870_v49 }
 0x8e3   :  { %v2008_v50 = vpop.permute.xlu0 %2007 }
 0x8e4   :  { %v2010_v51 = vunpack.i.h.bf16 %v2008_v50  ;;  %v2009_v52 = vunpack.i.l.bf16 %v2008_v50 }
 0x8e6   :  { %v1901_v53 = vpack.c.bf16 %v2010_v51, %v2009_v52  ;;  %v2045_v55 = vpop.eup %2044  ;;  %v1496_v51 = vld [vmem:[%s2446_s11] sm:$0xff]  ;;  %v1497_v52 = vld [vmem:[%s2446_s11 + $0x8] sm:$0xff] }
 0x8e7   :  { %v877_v41 = vmul.f32 %v2045_v55, %v2037_v35 }
 0x8e8   :  { %v1157_v54 = vpop.xlane.xlu1 %1156  ;;  %1902 = vmatprep.subr.bf16.mxu0 %v1901_v53 }
 0x8e9   :  { %1904 = vmatpush3.bf16.msra.mxu0 %v1901_v53  ;;  %v1923_v53 = vpack.c.bf16 %v1497_v52, %v1496_v51 }
 0x8ea   :  { %v2047_v56 = vpop.eup %2046  ;;  %1797 = vmatprep.subr.mxu0 %v965_v43 }
 0x8eb   :  { %v876_v58 = vmul.f32 %v2047_v56, %v2039_v38  ;;  %v1652_v38 = vld [vmem:[%s2438_s3] ss:$0 sm:$0xff] }
 0x8ec   :  { %v1154_v60 = vpop.xlane.xlu1 %1153  ;;  %v1500_v56 = vld [vmem:[%s2446_s11 + $0x20] sm:$0xff] }
 0x8ed   :  { %1794 = vmatprep.mubr.msk.f32.mxu0 %vm291_vm5, %v876_v58  ;;  %2048 = vrcp.f32 %v1154_v60  ;;  %v1501_v58 = vld [vmem:[%s2446_s11 + $0x28] sm:$0xff]  ;;  %v1502_v60 = vld [vmem:[%s2446_s11 + $0x30] sm:$0xff] }
 0x8ee   :  { %1795 = vmatmul.mubr.msk.f32.vlgmr.msra.gmra.mrb[2].mxu0 %vm291_vm5, %v877_v41  ;;  %2050 = vrcp.f32 %v1157_v54  ;;  %v1499_v54 = vld [vmem:[%s2446_s11 + $0x18] sm:$0xff]  ;;  %v1931_v41 = vpack.c.bf16 %v1501_v58, %v1500_v56 }
 0x8ef   :  { %1798 = vmatpush3.msra.mxu0 %v965_v43  ;;  %v1498_v43 = vld [vmem:[%s2446_s11 + $0x10] sm:$0xff] }
 0x8f0   :  { %v2013_v61 = vpop.permute.xlu1 %2012  ;;  %v1927_v55 = vpack.c.bf16 %v1499_v54, %v1498_v43 }
 0x8f1   :  { %v2015_v62 = vunpack.i.h.bf16 %v2013_v61  ;;  %v2014_v63 = vunpack.i.l.bf16 %v2013_v61  ;;  %v1503_v61 = vld [vmem:[%s2446_s11 + $0x38] sm:$0xff] }
 0x8f3   :  { %v1911_v2 = vpack.c.bf16 %v2015_v62, %v2014_v63  ;;  %v1935_v62 = vpack.c.bf16 %v1503_v61, %v1502_v60  ;;  %v1504_v63 = vld [vmem:[%s2446_s11 + $0x40] sm:$0xff] }
 0x8f5   :  { %1912 = vmatprep.subr.bf16.mxu0 %v1911_v2 }
 0x8f7   :  { %v2049_v3 = vpop.eup %2048 }
 0x8f8   :  { %v2051_v6 = vpop.eup %2050  ;;  %v1160_v7 = vmul.f32 %v2049_v3, %v2043_v45 }
 0x8f9   :  { %v1161_v8 = vmul.f32 %v2051_v6, %v2041_v40  ;;  %v1653_v40 = vld [vmem:[%s2439_s4] ss:$0 sm:$0xff] }
 0x9c1   :  { %v1796_v4 = vpop.f32.mrb[2].mxu0 }
 0x9c2   :  { %v956_v5 = vpop.f32.mrb[3].mxu0 }
 0x9c3   :  { %1799 = vmatprep.mubr.msk.f32.mxu0 %vm205_vm1, %v956_v5  ;;  %v1507_v5 = vld [vmem:[%s2446_s11 + $0x58] sm:$0xff] }
 0x9c4   :  { %1800 = vmatmul.mubr.msk.f32.vlgmr.msra.gmra.mrb[0].mxu0 %vm205_vm1, %v1796_v4  ;;  %v1506_v4 = vld [vmem:[%s2446_s11 + $0x50] sm:$0xff] }
 0x9c5   :  { %1914 = vmatpush3.bf16.msra.mxu0 %v1911_v2  ;;  %1813 = vmatprep.mubr.msk.f32.mxu0 %vm291_vm5, %v1160_v7  ;;  %v1505_v2 = vld [vmem:[%s2446_s11 + $0x48] sm:$0xff]  ;;  %v1943_v6 = vpack.c.bf16 %v1507_v5, %v1506_v4  ;;  %v1508_v7 = vld [vmem:[%s2446_s11 + $0x60] sm:$0xff] }
 0x9c6   :  { %1816 = vmatprep.subr.mxu0 %v1249_v42  ;;  %v1939_v3 = vpack.c.bf16 %v1505_v2, %v1504_v63 }
 0x9c8   :  { %1814 = vmatmul.mubr.msk.f32.vlgmr.msra.gmra.mrb[4].mxu0 %vm291_vm5, %v1161_v8 }
 0x9c9   :  { %1817 = vmatpush3.msra.mxu0 %v1249_v42  ;;  %v1509_v42 = vld [vmem:[%s2446_s11 + $0x68] sm:$0xff] }
 0x9ca   :  { %1924 = vmatprep.subr.bf16.mxu0 %v1923_v53  ;;  %v1947_v8 = vpack.c.bf16 %v1509_v42, %v1508_v7 }
 0xa9b   :  { %v1815_v9 = vpop.f32.mrb[4].mxu0 }
 0xa9c   :  { %v1240_v10 = vpop.f32.mrb[5].mxu0 }
 0xa9d   :  { %1818 = vmatprep.mubr.msk.f32.mxu0 %vm205_vm1, %v1240_v10  ;;  %v1511_v10 = vld [vmem:[%s2446_s11 + $0x78] sm:$0xff] }
 0xa9e   :  { %1819 = vmatmul.mubr.msk.f32.vlgmr.msra.gmra.mrb[0].mxu0 %vm205_vm1, %v1815_v9  ;;  %v1510_v9 = vld [vmem:[%s2446_s11 + $0x70] sm:$0xff] }
 0xa9f   :  { %1926 = vmatpush3.bf16.msra.mxu0 %v1923_v53 }
 0xaa0   :  { %1928 = vmatprep.subr.bf16.mxu0 %v1927_v55 }
 0xaa3   :  { %1930 = vmatpush3.bf16.msra.mxu0 %v1927_v55 }
 0xaa4   :  { %1932 = vmatprep.subr.bf16.mxu0 %v1931_v41 }
 0xaa7   :  { %1934 = vmatpush3.bf16.msra.mxu0 %v1931_v41 }
 0xaa8   :  { %1936 = vmatprep.subr.bf16.mxu0 %v1935_v62 }
 0xaab   :  { %1938 = vmatpush3.bf16.msra.mxu0 %v1935_v62 }
 0xaac   :  { %1940 = vmatprep.subr.bf16.mxu0 %v1939_v3 }
 0xaaf   :  { %1942 = vmatpush3.bf16.msra.mxu0 %v1939_v3 }
 0xab0   :  { %1944 = vmatprep.subr.bf16.mxu0 %v1943_v6 }
 0xab3   :  { %1946 = vmatpush3.bf16.msra.mxu0 %v1943_v6 }
 0xab4   :  { %1948 = vmatprep.subr.bf16.mxu0 %v1947_v8 }
 0xab7   :  { %1950 = vmatpush3.bf16.msra.mxu0 %v1947_v8 }
 0xb71   :  { %v1820_v12 = vpop.f32.mrb[0].mxu0 }
 0xb72   :  { %v1341_v13 = vadd.f32 %v1820_v12, %v1651_v11  ;;  %v1322_v14 = vpop.f32.mrb[1].mxu0  ;;  %v1654_v12 = vld [vmem:[%s2445_s10] ss:$0 sm:$0xff] }
 0xb73   :  { %v1340_v47 = vadd.f32 %v1651_v11, %v1322_v14  ;;  %v1951_v11 = vpack.c.bf16 %v1511_v10, %v1510_v9 }
 0xb74   :  { %v2332_v15 = vadd.f32 %v1341_v13, %v2181_v1 }
 0xb75   :  { %v2335_v16 = vadd.f32 %v1340_v47, %v2176_v0  ;;  %1952 = vmatprep.subr.bf16.mxu0 %v1951_v11 }
 0xb76   :  { %v1349_v17 = vsel %vm49_vm0, %v2332_v15, 0.0  ;;  %1954 = vmatpush3.bf16.msra.mxu0 %v1951_v11 }
 0xb77   :  { %1350 = vadd.xlane.f32.xlu1 %v1349_v17  ;;  %v1346_v18 = vsel %vm49_vm0, %v2335_v16, 0.0 }
 0xb78   :  { %1347 = vadd.xlane.f32.xlu0 %v1346_v18 }
 0xc04   :  { %v1351_v19 = vpop.xlane.xlu1 %1350 }
 0xc05   :  { %v1353_v20 = vmul.f32 0.03125, %v1351_v19  ;;  %v1348_v21 = vpop.xlane.xlu0 %1347 }
 0xc06   :  { %v1352_v22 = vmul.f32 0.03125, %v1348_v21 }
 0xc07   :  { %v1355_v23 = vsub.f32 %v2332_v15, %v1353_v20 }
 0xc08   :  { %v1354_v1 = vsub.f32 %v2335_v16, %v1352_v22 }
 0xc09   :  { %v1357_v25 = vmul.f32 %v1355_v23, %v1355_v23 }
 0xc0a   :  { %v1356_v24 = vmul.f32 %v1354_v1, %v1354_v1 }
 0xc0b   :  { %v1361_v26 = vsel %vm49_vm0, %v1357_v25, 0.0 }
 0xc0c   :  { %v1358_v0 = vsel %vm49_vm0, %v1356_v24, 0.0 }
 0xc0d   :  { %1359 = vadd.xlane.f32.xlu0 %v1358_v0 }
 0xc11   :  { %1362 = vadd.xlane.f32.xlu0 %v1361_v26 }
 0xc9a   :  { %v1360_v33 = vpop.xlane.xlu0 %1359 }
 0xc9b   :  { %v1364_v34 = vmul.f32 0.03125, %v1360_v33 }
 0xc9d   :  { %v1366_v57 = vadd.f32 1e-12, %v1364_v34 }
 0xc9e   :  { %v1363_v35 = vpop.xlane.xlu0 %1362 }
 0xc9f   :  { %2052 = vrsqrt.f32 %v1366_v57  ;;  %v1365_v59 = vmul.f32 0.03125, %v1363_v35 }
 0xca1   :  { %v1367_v36 = vadd.f32 1e-12, %v1365_v59 }
 0xca3   :  { %2054 = vrsqrt.f32 %v1367_v36 }
 0xca9   :  { %v2053_v37 = vpop.eup %2052 }
 0xcaa   :  { %v1370_v39 = vmul.f32 %v2053_v37, %v1354_v1 }
 0xcac   :  { %v1378_v44 = vmul.f32 %v1652_v38, %v1370_v39 }
 0xcad   :  { %v2055_v45 = vpop.eup %2054 }
 0xcae   :  { %v1371_v46 = vmul.f32 %v2055_v45, %v1355_v23  ;;  %v1386_v48 = vadd.f32 %v1653_v40, %v1378_v44 }
 0xcb0   :  { %v1379_v49 = vmul.f32 %v1652_v38, %v1371_v46  ;;  %1829 = vmatprep.mubr.msk.f32.mxu1 %vm49_vm0, %v1386_v48 }
 0xcb2   :  { %v1387_v50 = vadd.f32 %v1653_v40, %v1379_v49 }
 0xcb4   :  { %1830 = vmatmul.mubr.msk.f32.vlgmr.msra.gmra.mrb[14].mxu1 %vm49_vm0, %v1387_v50 }
 0xd87   :  { %v1831_v13 = vpop.f32.mrb[14].mxu1 }
 0xd88   :  { %v1477_v14 = vadd.f32 %v1831_v13, %v1654_v12  ;;  %v1471_v47 = vpop.f32.mrb[15].mxu1 }
 0xd89   :  { %v1472_v17 = vadd.f32 %v1654_v12, %v1471_v47 }
 0xd8a   :  { %v1658_v18 = vmul.f32 -1.702, %v1477_v14 }
 0xd8b   :  { %v1657_v19 = vmul.f32 -1.702, %v1472_v17 }
 0xd8c   :  { %v1486_v20 = vmul.f32 1.442695, %v1658_v18 }
 0xd8d   :  { %v1484_v21 = vmul.f32 1.442695, %v1657_v19 }
 0xd8e   :  { %2056 = vpow2.f32 %v1486_v20 }
 0xd8f   :  { %2058 = vpow2.f32 %v1484_v21 }
 0xd98   :  { %v2057_v22 = vpop.eup %2056 }
 0xd99   :  { %v2059_v23 = vpop.eup %2058  ;;  %v1489_v1 = vadd.f32 1.0, %v2057_v22 }
 0xd9a   :  { %v1488_v24 = vadd.f32 1.0, %v2059_v23 }
 0xd9b   :  { %2060 = vrcp.f32 %v1489_v1 }
 0xd9c   :  { %2062 = vrcp.f32 %v1488_v24 }
 0xda5   :  { %v2061_v0 = vpop.eup %2060 }
 0xda6   :  { %v2063_v25 = vpop.eup %2062  ;;  %v1495_v27 = vmul.f32 %v2061_v0, %v1477_v14 }
 0xda7   :  { %v1494_v26 = vmul.f32 %v2063_v25, %v1472_v17 }
 0xda9   :  { %1864 = vmatprep.mubr.f32.mxu0 %v1494_v26 }
 0xdaa   :  { %1865 = vmatmul.mubr.f32.vlgmr.msra.gmra.mrb[6].mxu0 %v1495_v27 }
 0xe7d   :  { %v1866_v29 = vpop.f32.mrb[6].mxu0 }
 0xe7e   :  { %v1591_v30 = vadd.f32 %v1866_v29, %v1659_v28  ;;  %v1585_v31 = vpop.f32.mrb[7].mxu0 }
 0xe7f   :  { %v1586_v32 = vadd.f32 %v1659_v28, %v1585_v31 }
 0xe80   :  { %v1595_v33 = vadd.f32 %v1591_v30, %v2332_v15 }
 0xe81   :  { %v1594_v34 = vadd.f32 %v1586_v32, %v2335_v16 }
 0xe82   :  { %1597 = vst.msk [vmem:[#allocation2 + $0x8] sm:$0xff] %vm49_vm0, %v1595_v33 }
 0xe83   :  { %1596 = vst.msk [vmem:[#allocation2] sm:$0xff] %vm49_vm0, %v1594_v34 }
 0xe84   :  { %2075 = shalt.err (!%p2072_p4)
}
 0xe85   :  { %s2076_s20 = scalar_lea.hbm %s2448_s13, 256 }
 0xe86   :  { %p2077_p5 = scmp.ne.s32.totalorder %s2448_s13, %s2076_s20  ;;  %p2080_p6 = scmp.lt.u32.totalorder %s2076_s20, %s2448_s13 }
 0xe88   :  { %p2082_p7 = pnand %p2080_p6, %p2077_p5 }
 0xe8a   :  { %2085 = shalt.err (!%p2082_p7)
}
 0xe8b   :  { %s2101_s8 = smov 128   ;;  %s2102_s23 = smov 8  }
 0xe8c   :  { %1609 = dma.vmem_to_hbm [thread:$0]  %s1604_s17, 256, %s2448_s13, [#allocation3], %s2101_s8, %s2101_s8, %s2102_s23  }
 0xe8d   :  { %2086 = dma.done.wait [#allocation3], 256  }
 0xe8e   :  { %2087 = vsyncadd [#allocation3], 4294967040 }
 0xe8f   :  { %1613 = vsyncpa [#allocation3], 1 }

</bundles_post_ra>
